<compile_context>
chip_gen: v6e
topology: v6e:2x2x1
jax: 0.10.0
libtpu: 0.0.40
codegen_flags: <defaults>
</compile_context>

<pallas_src>
import jax
import jax.numpy as jnp
from jax import lax
from jax.experimental import pallas as pl
from jax.experimental.pallas import tpu as pltpu

H1, H2, H3, HOUT = 512, 256, 128, 1


def _round_up(n, m):
    return ((n + m - 1) // m) * m


def qnetwork_kernel(x_ref,
                    w1_ref, b1_ref,
                    w2_ref, b2_ref,
                    w3_ref, b3_ref,
                    w4_ref, b4_ref,
                    out_ref):
    # x arrives f32; cast to bf16 in-kernel (no wrapper-side HBM pass).
    x = x_ref[...].astype(jnp.bfloat16)                                  # (bm, D)
    h = jnp.dot(x, w1_ref[...], preferred_element_type=jnp.float32)
    h = jnp.maximum(h + b1_ref[...], 0.0)                                # (bm, 512) f32
    h = jnp.dot(h.astype(jnp.bfloat16), w2_ref[...],
                preferred_element_type=jnp.float32)
    h = jnp.maximum(h + b2_ref[...], 0.0)                                # (bm, 256) f32
    h = jnp.dot(h.astype(jnp.bfloat16), w3_ref[...],
                preferred_element_type=jnp.float32)
    h = jnp.maximum(h + b3_ref[...], 0.0)                                # (bm, 128) f32
    # Final 128 -> 1 layer, produced lane-dense: w4 (1,128) contracted against
    # h (bm,128) on the 128 axis -> (1, bm) row (tiny f32 matmul).
    y = lax.dot_general(w4_ref[...], h,
                        dimension_numbers=(((1,), (1,)), ((), ())),
                        preferred_element_type=jnp.float32)              # (1, bm)
    y = y + b4_ref[...]                                                  # (1,1) bcast
    out_ref[...] = y[None, :, :].astype(out_ref.dtype)                   # (1, 1, bm)


def qnetwork_forward(x, params, *, bm=1024):
    """x: (B, input_dim) float32.  Returns (B,) float32 (squeeze(-1) applied)."""
    B, D = x.shape
    (w1, b1), (w2, b2), (w3, b3), (w4, b4) = params

    bm = max(128, (bm // 128) * 128)
    B128 = _round_up(B, 128)

    # Target tile: large for single-TC amortization, but <= ceil(B/2) (rounded
    # to 128) so the parallel grid has >= 2 steps when B >= 256 (v7x: 2 TCs).
    if B128 >= 256:
        target = max(128, min(bm, _round_up(B128 // 2, 128)))
    else:
        target = 128
    # Snap to the largest 128-multiple divisor of B128 (blocks divide exactly).
    bm_eff = 128
    cand = target
    while cand >= 128:
        if B128 % cand == 0:
            bm_eff = cand
            break
        cand -= 128
    grid = B128 // bm_eff

    # Pad the batch only if needed (no-op for typical 128-multiple batches).
    if B128 != B:
        x = jnp.pad(x, ((0, B128 - B), (0, 0)))

    # bf16 matmul operands for the weights (tiny, one-time casts); biases and
    # the final VPU/MXU epilogue stay f32.
    w1b = w1.astype(jnp.bfloat16)
    w2b = w2.astype(jnp.bfloat16)
    w3b = w3.astype(jnp.bfloat16)
    w4_row = w4.reshape(1, H3).astype(jnp.float32)           # (1, 128)
    b1r = b1.reshape(1, H1).astype(jnp.float32)
    b2r = b2.reshape(1, H2).astype(jnp.float32)
    b3r = b3.reshape(1, H3).astype(jnp.float32)
    b4r = b4.reshape(1, HOUT).astype(jnp.float32)            # (1, 1)

    full = lambda shape: pl.BlockSpec(shape, lambda i: (0, 0))  # VMEM-resident

    out3d = pl.pallas_call(
        qnetwork_kernel,
        out_shape=jax.ShapeDtypeStruct((grid, 1, bm_eff), jnp.float32),
        grid_spec=pltpu.PrefetchScalarGridSpec(
            num_scalar_prefetch=0,
            grid=(grid,),
            in_specs=[
                pl.BlockSpec((bm_eff, D), lambda i: (i, 0)),   # x tile (f32)
                full((D, H1)), full((1, H1)),
                full((H1, H2)), full((1, H2)),
                full((H2, H3)), full((1, H3)),
                full((1, H3)), full((1, HOUT)),
            ],
            out_specs=pl.BlockSpec((1, 1, bm_eff), lambda i: (i, 0, 0)),
        ),
        compiler_params=pltpu.CompilerParams(
            dimension_semantics=("parallel",)),
    )(x, w1b, b1r, w2b, b2r, w3b, b3r, w4_row, b4r)

    # (grid, 1, bm) -> (B,): tiles are contiguous row chunks; drop padding.
    return out3d.reshape(-1)[:B]


def init_params(key, input_dim):
    """Deterministic synthetic parameters with the same shapes as the PyTorch module."""
    dims = [(input_dim, H1), (H1, H2), (H2, H3), (H3, HOUT)]
    params = []
    for i, (din, dout) in enumerate(dims):
        kw, kb = jax.random.split(jax.random.fold_in(key, i))
        scale = 1.0 / jnp.sqrt(jnp.float32(din))
        w = jax.random.uniform(kw, (din, dout), jnp.float32, -scale, scale)
        b = jax.random.uniform(kb, (dout,), jnp.float32, -scale, scale)
        params.append((w, b))
    return params


def reference_forward(x, params):
    """Reference with the same precision policy (bf16 matmul operands, f32 acc,
    f32 final layer)."""
    (w1, b1), (w2, b2), (w3, b3), (w4, b4) = params
    h = jnp.dot(x.astype(jnp.bfloat16), w1.astype(jnp.bfloat16),
                preferred_element_type=jnp.float32) + b1
    h = jnp.maximum(h, 0.0)
    h = jnp.dot(h.astype(jnp.bfloat16), w2.astype(jnp.bfloat16),
                preferred_element_type=jnp.float32) + b2
    h = jnp.maximum(h, 0.0)
    h = jnp.dot(h.astype(jnp.bfloat16), w3.astype(jnp.bfloat16),
                preferred_element_type=jnp.float32) + b3
    h = jnp.maximum(h, 0.0)
    y = jnp.dot(h, w4, preferred_element_type=jnp.float32)[:, 0] + b4[0]
    return y


if __name__ == "__main__":
    key = jax.random.PRNGKey(0)
    B, D = 16, 32
    kx, kp = jax.random.split(key)
    x = jax.random.normal(kx, (B, D), jnp.float32)
    params = init_params(kp, D)

    out = qnetwork_forward(x, params)
    out = jax.block_until_ready(out)

    ref = reference_forward(x, params)
    assert out.shape == (B,), out.shape
    assert jnp.allclose(out, ref, atol=2e-3, rtol=2e-3), (
        jnp.max(jnp.abs(out - ref)))
    print("KERNEL_OK")
</pallas_src>

<mosaic_0001>
module attributes {stable_mosaic.version = 11 : i64} {
  func.func @qnetwork_kernel(%arg0: i32, %arg1: memref<128x32xf32, #tpu.memory_space<vmem>>, %arg2: memref<32x512xbf16, #tpu.memory_space<vmem>>, %arg3: memref<1x512xf32, #tpu.memory_space<vmem>>, %arg4: memref<512x256xbf16, #tpu.memory_space<vmem>>, %arg5: memref<1x256xf32, #tpu.memory_space<vmem>>, %arg6: memref<256x128xbf16, #tpu.memory_space<vmem>>, %arg7: memref<1x128xf32, #tpu.memory_space<vmem>>, %arg8: memref<1x128xf32, #tpu.memory_space<vmem>>, %arg9: memref<1x1xf32, #tpu.memory_space<vmem>>, %arg10: memref<1x1x128xf32, #tpu.memory_space<vmem>>) attributes {dimension_semantics = [#tpu.dimension_semantics<parallel>], iteration_bounds = array<i64: 1>, scalar_prefetch = 0 : i64, scratch_operands = 0 : i64, tpu.core_type = #tpu.core_type<tc>, window_params = [{transform_indices = @transform_0, window_bounds = array<i64: 128, 32>}, {pipeline_mode = #tpu.pipeline_mode<synchronous>, transform_indices = @transform_1, window_bounds = array<i64: 32, 512>}, {pipeline_mode = #tpu.pipeline_mode<synchronous>, transform_indices = @transform_2, window_bounds = array<i64: 1, 512>}, {pipeline_mode = #tpu.pipeline_mode<synchronous>, transform_indices = @transform_3, window_bounds = array<i64: 512, 256>}, {pipeline_mode = #tpu.pipeline_mode<synchronous>, transform_indices = @transform_4, window_bounds = array<i64: 1, 256>}, {pipeline_mode = #tpu.pipeline_mode<synchronous>, transform_indices = @transform_5, window_bounds = array<i64: 256, 128>}, {pipeline_mode = #tpu.pipeline_mode<synchronous>, transform_indices = @transform_6, window_bounds = array<i64: 1, 128>}, {pipeline_mode = #tpu.pipeline_mode<synchronous>, transform_indices = @transform_7, window_bounds = array<i64: 1, 128>}, {pipeline_mode = #tpu.pipeline_mode<synchronous>, transform_indices = @transform_8, window_bounds = array<i64: 1, 1>}, {transform_indices = @transform_9, window_bounds = array<i64: 1, 1, 128>}]} {
    %c0 = arith.constant 0 : index
    %c0_0 = arith.constant 0 : index
    %0 = vector.load %arg1[%c0, %c0_0] : memref<128x32xf32, #tpu.memory_space<vmem>>, vector<128x32xf32>
    %1 = arith.truncf %0 : vector<128x32xf32> to vector<128x32xbf16>
    %c0_1 = arith.constant 0 : index
    %c0_2 = arith.constant 0 : index
    %2 = vector.load %arg2[%c0_1, %c0_2] : memref<32x512xbf16, #tpu.memory_space<vmem>>, vector<32x512xbf16>
    %cst = arith.constant dense<0.000000e+00> : vector<128x512xf32>
    %3 = tpu.matmul %1, %2, %cst {dimension_numbers = #tpu.dot_dimension_numbers<[1], [0], [0], [1], [0, 0, 1, 1], [], []>} : vector<128x32xbf16>, vector<32x512xbf16>, vector<128x512xf32> -> vector<128x512xf32>
    %c0_3 = arith.constant 0 : index
    %c0_4 = arith.constant 0 : index
    %4 = vector.load %arg3[%c0_3, %c0_4] : memref<1x512xf32, #tpu.memory_space<vmem>>, vector<1x512xf32>
    %5 = vector.broadcast %4 : vector<1x512xf32> to vector<128x512xf32>
    %6 = arith.addf %3, %5 : vector<128x512xf32>
    %cst_5 = arith.constant 0.000000e+00 : f32
    %7 = vector.broadcast %cst_5 : f32 to vector<128x512xf32>
    %8 = arith.maximumf %6, %7 : vector<128x512xf32>
    %9 = arith.truncf %8 : vector<128x512xf32> to vector<128x512xbf16>
    %c0_6 = arith.constant 0 : index
    %c0_7 = arith.constant 0 : index
    %10 = vector.load %arg4[%c0_6, %c0_7] : memref<512x256xbf16, #tpu.memory_space<vmem>>, vector<512x256xbf16>
    %cst_8 = arith.constant dense<0.000000e+00> : vector<128x256xf32>
    %11 = tpu.matmul %9, %10, %cst_8 {dimension_numbers = #tpu.dot_dimension_numbers<[1], [0], [0], [1], [0, 0, 1, 1], [], []>} : vector<128x512xbf16>, vector<512x256xbf16>, vector<128x256xf32> -> vector<128x256xf32>
    %c0_9 = arith.constant 0 : index
    %c0_10 = arith.constant 0 : index
    %12 = vector.load %arg5[%c0_9, %c0_10] : memref<1x256xf32, #tpu.memory_space<vmem>>, vector<1x256xf32>
    %13 = vector.broadcast %12 : vector<1x256xf32> to vector<128x256xf32>
    %14 = arith.addf %11, %13 : vector<128x256xf32>
    %cst_11 = arith.constant 0.000000e+00 : f32
    %15 = vector.broadcast %cst_11 : f32 to vector<128x256xf32>
    %16 = arith.maximumf %14, %15 : vector<128x256xf32>
    %17 = arith.truncf %16 : vector<128x256xf32> to vector<128x256xbf16>
    %c0_12 = arith.constant 0 : index
    %c0_13 = arith.constant 0 : index
    %18 = vector.load %arg6[%c0_12, %c0_13] : memref<256x128xbf16, #tpu.memory_space<vmem>>, vector<256x128xbf16>
    %cst_14 = arith.constant dense<0.000000e+00> : vector<128x128xf32>
    %19 = tpu.matmul %17, %18, %cst_14 {dimension_numbers = #tpu.dot_dimension_numbers<[1], [0], [0], [1], [0, 0, 1, 1], [], []>} : vector<128x256xbf16>, vector<256x128xbf16>, vector<128x128xf32> -> vector<128x128xf32>
    %c0_15 = arith.constant 0 : index
    %c0_16 = arith.constant 0 : index
    %20 = vector.load %arg7[%c0_15, %c0_16] : memref<1x128xf32, #tpu.memory_space<vmem>>, vector<1x128xf32>
    %21 = vector.broadcast %20 : vector<1x128xf32> to vector<128x128xf32>
    %22 = arith.addf %19, %21 : vector<128x128xf32>
    %cst_17 = arith.constant 0.000000e+00 : f32
    %23 = vector.broadcast %cst_17 : f32 to vector<128x128xf32>
    %24 = arith.maximumf %22, %23 : vector<128x128xf32>
    %c0_18 = arith.constant 0 : index
    %c0_19 = arith.constant 0 : index
    %25 = vector.load %arg8[%c0_18, %c0_19] : memref<1x128xf32, #tpu.memory_space<vmem>>, vector<1x128xf32>
    %cst_20 = arith.constant dense<0.000000e+00> : vector<1x128xf32>
    %26 = tpu.matmul %25, %24, %cst_20 {dimension_numbers = #tpu.dot_dimension_numbers<[1], [1], [0], [0], [0, 0, 1, 0], [], []>} : vector<1x128xf32>, vector<128x128xf32>, vector<1x128xf32> -> vector<1x128xf32>
    %c0_21 = arith.constant 0 : index
    %c0_22 = arith.constant 0 : index
    %27 = vector.load %arg9[%c0_21, %c0_22] : memref<1x1xf32, #tpu.memory_space<vmem>>, vector<1x1xf32>
    %28 = vector.broadcast %27 : vector<1x1xf32> to vector<1x128xf32>
    %29 = arith.addf %26, %28 : vector<1x128xf32>
    %30 = vector.shape_cast %29 : vector<1x128xf32> to vector<1x1x128xf32>
    %c0_23 = arith.constant 0 : index
    %c0_24 = arith.constant 0 : index
    %c0_25 = arith.constant 0 : index
    %31 = vector.load %arg10[%c0_23, %c0_24, %c0_25] : memref<1x1x128xf32, #tpu.memory_space<vmem>>, vector<1x1x128xf32>
    tpu.vector_store %arg10[%c0_23, %c0_24, %c0_25], %30 {strides = array<i32>} : memref<1x1x128xf32, #tpu.memory_space<vmem>>, vector<1x1x128xf32>,
    return
  }
  func.func @transform_0(%arg0: i32) -> (i32, i32) {
    %c0_i32 = arith.constant 0 : i32
    %c0_i32_0 = arith.constant 0 : i32
    return %arg0, %c0_i32 : i32, i32
  }
  func.func @transform_1(%arg0: i32) -> (i32, i32) {
    %c0_i32 = arith.constant 0 : i32
    %c0_i32_0 = arith.constant 0 : i32
    %c0_i32_1 = arith.constant 0 : i32
    return %c0_i32, %c0_i32_0 : i32, i32
  }
  func.func @transform_2(%arg0: i32) -> (i32, i32) {
    %c0_i32 = arith.constant 0 : i32
    %c0_i32_0 = arith.constant 0 : i32
    %c0_i32_1 = arith.constant 0 : i32
    return %c0_i32, %c0_i32_0 : i32, i32
  }
  func.func @transform_3(%arg0: i32) -> (i32, i32) {
    %c0_i32 = arith.constant 0 : i32
    %c0_i32_0 = arith.constant 0 : i32
    %c0_i32_1 = arith.constant 0 : i32
    return %c0_i32, %c0_i32_0 : i32, i32
  }
  func.func @transform_4(%arg0: i32) -> (i32, i32) {
    %c0_i32 = arith.constant 0 : i32
    %c0_i32_0 = arith.constant 0 : i32
    %c0_i32_1 = arith.constant 0 : i32
    return %c0_i32, %c0_i32_0 : i32, i32
  }
  func.func @transform_5(%arg0: i32) -> (i32, i32) {
    %c0_i32 = arith.constant 0 : i32
    %c0_i32_0 = arith.constant 0 : i32
    %c0_i32_1 = arith.constant 0 : i32
    return %c0_i32, %c0_i32_0 : i32, i32
  }
  func.func @transform_6(%arg0: i32) -> (i32, i32) {
    %c0_i32 = arith.constant 0 : i32
    %c0_i32_0 = arith.constant 0 : i32
    %c0_i32_1 = arith.constant 0 : i32
    return %c0_i32, %c0_i32_0 : i32, i32
  }
  func.func @transform_7(%arg0: i32) -> (i32, i32) {
    %c0_i32 = arith.constant 0 : i32
    %c0_i32_0 = arith.constant 0 : i32
    %c0_i32_1 = arith.constant 0 : i32
    return %c0_i32, %c0_i32_0 : i32, i32
  }
  func.func @transform_8(%arg0: i32) -> (i32, i32) {
    %c0_i32 = arith.constant 0 : i32
    %c0_i32_0 = arith.constant 0 : i32
    %c0_i32_1 = arith.constant 0 : i32
    return %c0_i32, %c0_i32_0 : i32, i32
  }
  func.func @transform_9(%arg0: i32) -> (i32, i32, i32) {
    %c0_i32 = arith.constant 0 : i32
    %c0_i32_0 = arith.constant 0 : i32
    %c0_i32_1 = arith.constant 0 : i32
    return %arg0, %c0_i32, %c0_i32_0 : i32, i32, i32
  }
}

</mosaic_0001>

<bundles_post_ra>
// kernel: tpu_custom_call.1
= control target key start
LH: loop header
LB: loop body
LE: loop exit
PB: predicated region body
PF: predicated region fallthrough
CT: control target
= control target key end

     0   :  { %s2332_s0 = inlined_call_operand.vmem [shape: f32[128,32], index: 0, kind: input, shape index: {}]   ;;  %s2333_s1 = inlined_call_operand.hbm [shape: bf16[32,512], index: 1, kind: input, shape index: {}]   ;;  %s2334_s2 = inlined_call_operand.vmem [shape: f32[1,512], index: 2, kind: input, shape index: {}]   ;;  %s2335_s3 = inlined_call_operand.hbm [shape: bf16[512,256], index: 3, kind: input, shape index: {}]   ;;  %s2336_s4 = inlined_call_operand.vmem [shape: f32[1,256], index: 4, kind: input, shape index: {}]   ;;  %s2337_s5 = inlined_call_operand.vmem [shape: bf16[256,128], index: 5, kind: input, shape index: {}]   ;;  %s2338_s6 = inlined_call_operand.vmem [shape: f32[1,128], index: 6, kind: input, shape index: {}]   ;;  %s2339_s7 = inlined_call_operand.vmem [shape: f32[1,128], index: 7, kind: input, shape index: {}]   ;;  %s2340_s8 = inlined_call_operand.<no memory space> [shape: f32[1,1], index: 8, kind: input, shape index: {}]   ;;  %s2341_s9 = inlined_call_operand.hbm [shape: f32[1,1,128], index: 9, kind: output, shape index: {}]  }
   0x1   :  { %v14_v0 = vstv %s2340_s8 }
   0x2   :  { %15 = vst [vmem:[#allocation2] sm:$0x1] %v14_v0 }
   0x3   :  { %16 = vsyncpa [#allocation4], 0 }
   0x4   :  { %17 = vsyncpa [#allocation7], 0 }
   0x5   :  { %18 = vsyncpa [#allocation5], 0  ;;  %s1943_s11 = smov [#allocation3]  }
   0x6   :  { %s26_s12 = sshll.u32 %s1943_s11, 4  ;;  %s27_s12 = int_to_ptr.vmem [resolvable:$true] %s26_s12 }
   0x7   :  { %s1885_s13 = scalar_lea.vmem %s27_s12, 1024  ;;  %p1890_p1 = scmp.lt.s32.totalorder %s27_s12, %s27_s12 }
   0x8   :  { %p1886_p0 = scmp.ne.s32.totalorder %s27_s12, %s1885_s13  ;;  %p1891_p2 = scmp.lt.s32.totalorder %s1885_s13, %s1885_s13 }
   0xa   :  { %p1892_p3 = por %p1891_p2, %p1890_p1 }
   0xc   :  { %p1893_p4 = pnand %p1892_p3, %p1886_p0 }
   0xe   :  { %1896 = shalt.err (!%p1893_p4)
}
   0xf   :  { %s1944_s14 = smov 256   ;;  %s1945_s15 = smov 16  }
  0x10   :  { %32 = dma.hbm_to_vmem [thread:$0]  %s2333_s1, 1024, %s27_s12, [#allocation4], %s1944_s14, %s1944_s14, %s1945_s15  }
  0x11   :  { %s1946_s8 = smov [#allocation6]  }
  0x12   :  { %s40_s18 = sshll.u32 %s1946_s8, 4  ;;  %s41_s18 = int_to_ptr.vmem [resolvable:$true] %s40_s18 }
  0x13   :  { %s1905_s19 = scalar_lea.vmem %s41_s18, 8192  ;;  %p1910_p6 = scmp.lt.s32.totalorder %s41_s18, %s41_s18 }
  0x14   :  { %p1906_p5 = scmp.ne.s32.totalorder %s41_s18, %s1905_s19  ;;  %p1911_p7 = scmp.lt.s32.totalorder %s1905_s19, %s1905_s19 }
  0x16   :  { %p1912_p8 = por %p1911_p7, %p1910_p6 }
  0x18   :  { %p1913_p9 = pnand %p1912_p8, %p1906_p5 }
  0x1a   :  { %1916 = shalt.err (!%p1913_p9)
}
  0x1b   :  { %s1947_s20 = smov 128   ;;  %s1948_s21 = smov 8  }
  0x1c   :  { %46 = dma.hbm_to_vmem [thread:$0]  %s2335_s3, 8192, %s41_s18, [#allocation7], %s1947_s20, %s1947_s20, %s1948_s21  }
  0x1d   :  { %1937 = dma.done.wait [#allocation4], 1024  }
  0x1e   :  { %1938 = vsyncadd [#allocation4], 4294966272 }
  0x1f   :  { %1939 = dma.done.wait [#allocation7], 8192  }
  0x20   :  { %1940 = vsyncadd [#allocation7], 4294959104  ;;  %v1949_v1 = vmov 0   ;;  %v1753_v2 = vld [vmem:[#allocation3 + $0x24] ss:$16 sps:$4 sm:$0xff]   ;;  %vm158_vm0 = vcmask 261120  }
  0x21   :  { %215 = vmatprep.mubr.bf16.mxu0 %v1949_v1  ;;  %328 = vmatprep.mubr.bf16.mxu1 %v1949_v1  ;;  %v1755_v3 = vld [vmem:[#allocation3 + $0x2c] ss:$16 sps:$4 sm:$0xff]   ;;  %v1757_v4 = vld [vmem:[#allocation3 + $0x20] ss:$16 sps:$4 sm:$0xff]   ;;  %v1758_v5 = vld [vmem:[#allocation3 + $0x28] ss:$16 sps:$4 sm:$0xff]  }
  0x22   :  { %1752 = vset.pattern.permute.xlu0 %v1949_v1  ;;  %195 = vmatprep.subr.bf16.mxu0 %v1753_v2  ;;  %v1759_v6 = vld [vmem:[#allocation3 + $0x4] ss:$16 sps:$4 sm:$0xff]   ;;  %v1761_v7 = vld [vmem:[#allocation3 + $0xc] ss:$16 sps:$4 sm:$0xff]   ;;  %v1763_v8 = vld [vmem:[#allocation3] ss:$16 sps:$4 sm:$0xff]  }
  0x23   :  { %308 = vmatprep.subr.bf16.mxu1 %v1755_v3  ;;  %196 = vmatpush1.bf16.msra.mxu0 %v1757_v4  ;;  %v1764_v9 = vld [vmem:[#allocation3 + $0x8] ss:$16 sps:$4 sm:$0xff]   ;;  %v64_v10 = vld [vmem:[%s2332_s0] sm:$0xff]  ;;  %v66_v13 = vld [vmem:[%s2332_s0 + $0x10] sm:$0xff]  ;;  %vm1951_vm1 = vmmov 0   ;;  %s1952_s8 = smov [#allocation8]  }
  0x24   :  { %309 = vmatpush1.bf16.msra.mxu1 %v1758_v5  ;;  %197 = vmatprep.subr.bf16.mxu0 %v1759_v6  ;;  %v65_v11 = vld [vmem:[%s2332_s0 + $0x8] sm:$0xff]  ;;  %v67_v14 = vld [vmem:[%s2332_s0 + $0x18] sm:$0xff]  ;;  %v68_v27 = vld [vmem:[%s2332_s0 + $0x20] sm:$0xff]  ;;  %s1511_s18 = sshll.u32 %s1952_s8, 4  ;;  %s1512_s18 = int_to_ptr.vmem [resolvable:$true] %s1511_s18 }
  0x25   :  { %310 = vmatprep.subr.bf16.mxu1 %v1761_v7  ;;  %v80_v12 = vpack.c.bf16 %v65_v11, %v64_v10  ;;  %v1765_v15 = vld [vmem:[#allocation6 + $0x70] ss:$8 sps:$4 sm:$0xff]   ;;  %v1767_v16 = vld [vmem:[#allocation6 + $0x74] ss:$8 sps:$4 sm:$0xff]   ;;  %v1771_v19 = vld [vmem:[#allocation6 + $0x60] ss:$8 sps:$4 sm:$0xff]   ;;  %v81_v21 = vpack.c.bf16 %v67_v14, %v66_v13  ;;  %p1922_p11 = scmp.lt.s32.totalorder %s1512_s18, %s1512_s18 }
  0x26   :  { %v1768_v17 = vld [vmem:[#allocation6 + $0x170] ss:$8 sps:$4 sm:$0xff]   ;;  %v1770_v18 = vld [vmem:[#allocation6 + $0x174] ss:$8 sps:$4 sm:$0xff]   ;;  %v1773_v20 = vld [vmem:[#allocation6 + $0x64] ss:$8 sps:$4 sm:$0xff]  }
  0x27   :  { %198 = vmatpush1.bf16.msra.mxu0 %v1763_v8  ;;  %v1776_v22 = vld [vmem:[#allocation6 + $0x164] ss:$8 sps:$4 sm:$0xff]   ;;  %v1774_v23 = vld [vmem:[#allocation6 + $0x160] ss:$8 sps:$4 sm:$0xff]   ;;  %v1779_v24 = vld [vmem:[#allocation6 + $0x54] ss:$8 sps:$4 sm:$0xff]  }
  0x28   :  { %311 = vmatpush1.bf16.msra.mxu1 %v1764_v9  ;;  %901 = vmatprep.subr.bf16.mxu0 %v1767_v16  ;;  %v1777_v25 = vld [vmem:[#allocation6 + $0x50] ss:$8 sps:$4 sm:$0xff]   ;;  %v1782_v26 = vld [vmem:[#allocation6 + $0x154] ss:$8 sps:$4 sm:$0xff]   ;;  %v1785_v28 = vld [vmem:[#allocation6 + $0x44] ss:$8 sps:$4 sm:$0xff]  }
  0x29   :  { %1014 = vmatprep.subr.bf16.mxu1 %v1770_v18  ;;  %v69_v29 = vld [vmem:[%s2332_s0 + $0x28] sm:$0xff]  ;;  %v1780_v30 = vld [vmem:[#allocation6 + $0x150] ss:$8 sps:$4 sm:$0xff]   ;;  %v1791_v35 = vld [vmem:[#allocation6 + $0x34] ss:$8 sps:$4 sm:$0xff]   ;;  %s1917_s19 = scalar_lea.vmem %s1512_s18, 16 }
  0x2a   :  { %1529 = vmatmul.mubr.msk.bf16.vlgmr.msra.gmra.mxu0 %vm158_vm0, %v80_v12  ;;  %v1783_v31 = vld [vmem:[#allocation6 + $0x40] ss:$8 sps:$4 sm:$0xff]   ;;  %v1788_v32 = vld [vmem:[#allocation6 + $0x144] ss:$8 sps:$4 sm:$0xff]   ;;  %v82_v33 = vpack.c.bf16 %v69_v29, %v68_v27  ;;  %v1789_v36 = vld [vmem:[#allocation6 + $0x30] ss:$8 sps:$4 sm:$0xff]   ;;  %p1918_p10 = scmp.ne.s32.totalorder %s1512_s18, %s1917_s19 }
  0x2b   :  { %1537 = vmatmul.mubr.msk.bf16.vlgmr.msra.gmra.mxu1 %vm158_vm0, %v80_v12  ;;  %225 = vmatprep.mubr.bf16.mxu0 %v1949_v1  ;;  %v1786_v34 = vld [vmem:[#allocation6 + $0x140] ss:$8 sps:$4 sm:$0xff]   ;;  %v1794_v37 = vld [vmem:[#allocation6 + $0x134] ss:$8 sps:$4 sm:$0xff]   ;;  %v1797_v39 = vld [vmem:[#allocation6 + $0x24] ss:$8 sps:$4 sm:$0xff]  }
  0x2c   :  { %338 = vmatprep.mubr.bf16.mxu1 %v1949_v1  ;;  %902 = vmatpush1.bf16.msra.mxu0 %v1765_v15  ;;  %v70_v38 = vld [vmem:[%s2332_s0 + $0x30] sm:$0xff]  ;;  %v71_v40 = vld [vmem:[%s2332_s0 + $0x38] sm:$0xff]  ;;  %v1795_v42 = vld [vmem:[#allocation6 + $0x20] ss:$8 sps:$4 sm:$0xff]   ;;  %s1921_s20 = scalar_lea.vmem %s1512_s18, 32 }
  0x2d   :  { %1015 = vmatpush1.bf16.msra.mxu1 %v1768_v17  ;;  %903 = vmatprep.subr.bf16.mxu0 %v1773_v20  ;;  %v1792_v41 = vld [vmem:[#allocation6 + $0x130] ss:$8 sps:$4 sm:$0xff]   ;;  %v1800_v43 = vld [vmem:[#allocation6 + $0x124] ss:$8 sps:$4 sm:$0xff]   ;;  %v83_v44 = vpack.c.bf16 %v71_v40, %v70_v38  ;;  %v1798_v45 = vld [vmem:[#allocation6 + $0x120] ss:$8 sps:$4 sm:$0xff]   ;;  %p1923_p12 = scmp.lt.s32.totalorder %s1921_s20, %s1917_s19 }
  0x2e   :  { %1016 = vmatprep.subr.bf16.mxu1 %v1776_v22  ;;  %v1803_v46 = vld [vmem:[#allocation6 + $0x14] ss:$8 sps:$4 sm:$0xff]   ;;  %v1801_v47 = vld [vmem:[#allocation6 + $0x10] ss:$8 sps:$4 sm:$0xff]   ;;  %v1809_v50 = vld [vmem:[#allocation6 + $0x4] ss:$8 sps:$4 sm:$0xff]  }
  0x2f   :  { %v1806_v48 = vld [vmem:[#allocation6 + $0x114] ss:$8 sps:$4 sm:$0xff]   ;;  %v73_v51 = vld [vmem:[%s2332_s0 + $0x48] sm:$0xff]  ;;  %v1804_v52 = vld [vmem:[#allocation6 + $0x110] ss:$8 sps:$4 sm:$0xff]   ;;  %p1924_p13 = por %p1923_p12, %p1922_p11 }
  0x30   :  { %904 = vmatpush1.bf16.msra.mxu0 %v1771_v19  ;;  %v72_v49 = vld [vmem:[%s2332_s0 + $0x40] sm:$0xff]  ;;  %v74_v58 = vld [vmem:[%s2332_s0 + $0x50] sm:$0xff]  ;;  %v75_v61 = vld [vmem:[%s2332_s0 + $0x58] sm:$0xff] }
  0x31   :  { %1017 = vmatpush1.bf16.msra.mxu1 %v1774_v23  ;;  %905 = vmatprep.subr.bf16.mxu0 %v1779_v24  ;;  %v1807_v53 = vld [vmem:[#allocation6] ss:$8 sps:$4 sm:$0xff]   ;;  %v1812_v54 = vld [vmem:[#allocation6 + $0x104] ss:$8 sps:$4 sm:$0xff]   ;;  %v84_v55 = vpack.c.bf16 %v73_v51, %v72_v49  ;;  %v1815_v57 = vld [vmem:[#allocation6 + $0xf4] ss:$8 sps:$4 sm:$0xff]   ;;  %v85_v3 = vpack.c.bf16 %v75_v61, %v74_v58  ;;  %p1925_p0 = pnand %p1924_p13, %p1918_p10 }
  0x32   :  { %1530 = vmatmul.mubr.msk.bf16.gmra.mxu0 %vm158_vm0, %v81_v21  ;;  %1018 = vmatprep.subr.bf16.mxu1 %v1782_v26  ;;  %v1810_v56 = vld [vmem:[#allocation6 + $0x100] ss:$8 sps:$4 sm:$0xff]   ;;  %v1813_v59 = vld [vmem:[#allocation6 + $0xf0] ss:$8 sps:$4 sm:$0xff]   ;;  %v1818_v60 = vld [vmem:[#allocation6 + $0x1f4] ss:$8 sps:$4 sm:$0xff]  }
  0x33   :  { %1538 = vmatmul.mubr.msk.bf16.gmra.mxu1 %vm158_vm0, %v81_v21  ;;  %235 = vmatprep.mubr.bf16.mxu0 %v1949_v1  ;;  %v1821_v62 = vld [vmem:[#allocation6 + $0xe4] ss:$8 sps:$4 sm:$0xff]   ;;  %v1816_v63 = vld [vmem:[#allocation6 + $0x1f0] ss:$8 sps:$4 sm:$0xff]   ;;  %v1819_v0 = vld [vmem:[#allocation6 + $0xe0] ss:$8 sps:$4 sm:$0xff]  }
  0x34   :  { %348 = vmatprep.mubr.bf16.mxu1 %v1949_v1  ;;  %906 = vmatpush1.bf16.msra.mxu0 %v1777_v25  ;;  %v1824_v2 = vld [vmem:[#allocation6 + $0x1e4] ss:$8 sps:$4 sm:$0xff]   ;;  %v1822_v4 = vld [vmem:[#allocation6 + $0x1e0] ss:$8 sps:$4 sm:$0xff]   ;;  %v1827_v5 = vld [vmem:[#allocation6 + $0xd4] ss:$8 sps:$4 sm:$0xff]  }
  0x35   :  { %907 = vmatprep.subr.bf16.mxu0 %v1785_v28  ;;  %1019 = vmatpush1.bf16.msra.mxu1 %v1780_v30  ;;  %v1825_v6 = vld [vmem:[#allocation6 + $0xd0] ss:$8 sps:$4 sm:$0xff]   ;;  %v1830_v7 = vld [vmem:[#allocation6 + $0x1d4] ss:$8 sps:$4 sm:$0xff]   ;;  %v1833_v8 = vld [vmem:[#allocation6 + $0xc4] ss:$8 sps:$4 sm:$0xff]  }
  0x36   :  { %1020 = vmatprep.subr.bf16.mxu1 %v1788_v32  ;;  %v76_v9 = vld [vmem:[%s2332_s0 + $0x60] sm:$0xff]  ;;  %v77_v10 = vld [vmem:[%s2332_s0 + $0x68] sm:$0xff]  ;;  %v1828_v11 = vld [vmem:[#allocation6 + $0x1d0] ss:$8 sps:$4 sm:$0xff]  }
  0x37   :  { %v1831_v12 = vld [vmem:[#allocation6 + $0xc0] ss:$8 sps:$4 sm:$0xff]   ;;  %v1836_v13 = vld [vmem:[#allocation6 + $0x1c4] ss:$8 sps:$4 sm:$0xff]   ;;  %v86_v14 = vpack.c.bf16 %v77_v10, %v76_v9  ;;  %v1839_v16 = vld [vmem:[#allocation6 + $0xb4] ss:$8 sps:$4 sm:$0xff]  }
  0x38   :  { %908 = vmatpush1.bf16.msra.mxu0 %v1783_v31  ;;  %v1834_v15 = vld [vmem:[#allocation6 + $0x1c0] ss:$8 sps:$4 sm:$0xff]   ;;  %v1837_v17 = vld [vmem:[#allocation6 + $0xb0] ss:$8 sps:$4 sm:$0xff]   ;;  %v1842_v18 = vld [vmem:[#allocation6 + $0x1b4] ss:$8 sps:$4 sm:$0xff]  }
  0x39   :  { %1021 = vmatpush1.bf16.msra.mxu1 %v1786_v34  ;;  %909 = vmatprep.subr.bf16.mxu0 %v1791_v35  ;;  %v78_v19 = vld [vmem:[%s2332_s0 + $0x70] sm:$0xff]  ;;  %v79_v20 = vld [vmem:[%s2332_s0 + $0x78] sm:$0xff]  ;;  %v1843_v24 = vld [vmem:[#allocation6 + $0xa0] ss:$8 sps:$4 sm:$0xff]   ;;  %v98_v35 = vlaneseq }
  0x3a   :  { %1531 = vmatmul.mubr.msk.bf16.gmra.mxu0 %vm158_vm0, %v82_v33  ;;  %1022 = vmatprep.subr.bf16.mxu1 %v1794_v37  ;;  %v1840_v21 = vld [vmem:[#allocation6 + $0x1b0] ss:$8 sps:$4 sm:$0xff]   ;;  %v87_v22 = vpack.c.bf16 %v79_v20, %v78_v19  ;;  %v1848_v23 = vld [vmem:[#allocation6 + $0x1a4] ss:$8 sps:$4 sm:$0xff]   ;;  %v1846_v25 = vld [vmem:[#allocation6 + $0x1a0] ss:$8 sps:$4 sm:$0xff]  }
  0x3b   :  { %1539 = vmatmul.mubr.msk.bf16.gmra.mxu1 %vm158_vm0, %v82_v33  ;;  %245 = vmatprep.mubr.bf16.mxu0 %v1949_v1  ;;  %v1851_v26 = vld [vmem:[#allocation6 + $0x94] ss:$8 sps:$4 sm:$0xff]   ;;  %v1849_v28 = vld [vmem:[#allocation6 + $0x90] ss:$8 sps:$4 sm:$0xff]   ;;  %v1857_v30 = vld [vmem:[#allocation6 + $0x84] ss:$8 sps:$4 sm:$0xff]  }
  0x3c   :  { %358 = vmatprep.mubr.bf16.mxu1 %v1949_v1  ;;  %910 = vmatpush1.bf16.msra.mxu0 %v1789_v36  ;;  %v1854_v27 = vld [vmem:[#allocation6 + $0x194] ss:$8 sps:$4 sm:$0xff]   ;;  %v1852_v29 = vld [vmem:[#allocation6 + $0x190] ss:$8 sps:$4 sm:$0xff]   ;;  %v1860_v31 = vld [vmem:[#allocation6 + $0x184] ss:$8 sps:$4 sm:$0xff]  }
  0x3d   :  { %911 = vmatprep.subr.bf16.mxu0 %v1797_v39  ;;  %1023 = vmatpush1.bf16.msra.mxu1 %v1792_v41  ;;  %v1855_v32 = vld [vmem:[#allocation6 + $0x80] ss:$8 sps:$4 sm:$0xff]   ;;  %v1861_v34 = vld [vmem:[%s2337_s5 + $0x78] sm:$0xff]   ;;  %v2096_v36 = vshrl.u32 %v98_v35, 7  ;;  %v1863_v19 = vld [vmem:[%s2337_s5 + $0x70] sm:$0xff]  }
  0x3e   :  { %1024 = vmatprep.subr.bf16.mxu1 %v1800_v43  ;;  %v1858_v33 = vld [vmem:[#allocation6 + $0x180] ss:$8 sps:$4 sm:$0xff]  }
  0x3f   :  { %v104_v37 = vsub.s32 1, %v2096_v36  ;;  %v112_v38 = vsub.s32 3, %v2096_v36  ;;  %v2101_v39 = vsub.s32 0, %v2096_v36  ;;  %v108_v40 = vsub.s32 2, %v2096_v36  ;;  %v96_v41 = vld [vmem:[%s2334_s2] sm:$0xf] }
  0x40   :  { %912 = vmatpush1.bf16.msra.mxu0 %v1795_v42 }
  0x41   :  { %1025 = vmatpush1.bf16.msra.mxu1 %v1798_v45  ;;  %913 = vmatprep.subr.bf16.mxu0 %v1803_v46  ;;  %v2111_v45 = vrot.slane %v96_v41, %v112_v38  ;;  %v2114_v46 = vrot.slane %v96_v41, %v2101_v39 }
  0x42   :  { %1532 = vmatmul.mubr.msk.bf16.gmra.mxu0 %vm158_vm0, %v83_v44  ;;  %1026 = vmatprep.subr.bf16.mxu1 %v1806_v48 }
  0x43   :  { %1540 = vmatmul.mubr.msk.bf16.gmra.mxu1 %vm158_vm0, %v83_v44  ;;  %255 = vmatprep.mubr.bf16.mxu0 %v1949_v1  ;;  %v2109_v44 = vrot.slane %v96_v41, %v104_v37 }
  0x44   :  { %368 = vmatprep.mubr.bf16.mxu1 %v1949_v1  ;;  %914 = vmatpush1.bf16.msra.mxu0 %v1801_v47  ;;  %v2116_v47 = vrot.slane %v96_v41, %v108_v40 }
  0x45   :  { %915 = vmatprep.subr.bf16.mxu0 %v1809_v50  ;;  %1027 = vmatpush1.bf16.msra.mxu1 %v1804_v52 }
  0x46   :  { %1028 = vmatprep.subr.bf16.mxu1 %v1812_v54 }
  0x48   :  { %916 = vmatpush1.bf16.msra.mxu0 %v1807_v53 }
  0x49   :  { %1029 = vmatpush1.bf16.msra.mxu1 %v1810_v56  ;;  %917 = vmatprep.subr.bf16.mxu0 %v1815_v57 }
  0x4a   :  { %1533 = vmatmul.mubr.msk.bf16.gmra.mxu0 %vm158_vm0, %v84_v55  ;;  %1030 = vmatprep.subr.bf16.mxu1 %v1818_v60 }
  0x4b   :  { %1541 = vmatmul.mubr.msk.bf16.gmra.mxu1 %vm158_vm0, %v84_v55  ;;  %265 = vmatprep.mubr.bf16.mxu0 %v1949_v1 }
  0x4c   :  { %378 = vmatprep.mubr.bf16.mxu1 %v1949_v1  ;;  %918 = vmatpush2.bf16.msra.mxu0 %v1813_v59 }
  0x4d   :  { %919 = vmatprep.subr.bf16.mxu0 %v1821_v62  ;;  %1031 = vmatpush2.bf16.msra.mxu1 %v1816_v63 }
  0x4e   :  { %1032 = vmatprep.subr.bf16.mxu1 %v1824_v2 }
  0x50   :  { %920 = vmatpush2.bf16.msra.mxu0 %v1819_v0 }
  0x51   :  { %1033 = vmatpush2.bf16.msra.mxu1 %v1822_v4  ;;  %921 = vmatprep.subr.bf16.mxu0 %v1827_v5 }
  0x52   :  { %1534 = vmatmul.mubr.msk.bf16.gmra.mxu0 %vm158_vm0, %v85_v3  ;;  %1034 = vmatprep.subr.bf16.mxu1 %v1830_v7 }
  0x53   :  { %1542 = vmatmul.mubr.msk.bf16.gmra.mxu1 %vm158_vm0, %v85_v3  ;;  %275 = vmatprep.mubr.bf16.mxu0 %v1949_v1 }
  0x54   :  { %388 = vmatprep.mubr.bf16.mxu1 %v1949_v1  ;;  %922 = vmatpush2.bf16.msra.mxu0 %v1825_v6 }
  0x55   :  { %923 = vmatprep.subr.bf16.mxu0 %v1833_v8  ;;  %1035 = vmatpush2.bf16.msra.mxu1 %v1828_v11 }
  0x56   :  { %1036 = vmatprep.subr.bf16.mxu1 %v1836_v13  ;;  %v1862_v13 = vld [vmem:[%s2337_s5 + $0x38] sm:$0xff]  }
  0x58   :  { %924 = vmatpush2.bf16.msra.mxu0 %v1831_v12 }
  0x59   :  { %1037 = vmatpush2.bf16.msra.mxu1 %v1834_v15  ;;  %925 = vmatprep.subr.bf16.mxu0 %v1839_v16 }
  0x5a   :  { %1535 = vmatmul.mubr.msk.bf16.gmra.mxu0 %vm158_vm0, %v86_v14  ;;  %1038 = vmatprep.subr.bf16.mxu1 %v1842_v18 }
  0x5b   :  { %1543 = vmatmul.mubr.msk.bf16.gmra.mxu1 %vm158_vm0, %v86_v14  ;;  %285 = vmatprep.mubr.bf16.mxu0 %v1949_v1 }
  0x5c   :  { %398 = vmatprep.mubr.bf16.mxu1 %v1949_v1  ;;  %926 = vmatpush2.bf16.msra.mxu0 %v1837_v17  ;;  %v1845_v1 = vld [vmem:[#allocation6 + $0xa4] ss:$8 sps:$4 sm:$0xff]  }
  0x5d   :  { %1039 = vmatpush2.bf16.msra.mxu1 %v1840_v21  ;;  %927 = vmatprep.subr.bf16.mxu0 %v1845_v1 }
  0x5e   :  { %1040 = vmatprep.subr.bf16.mxu1 %v1848_v23 }
  0x60   :  { %928 = vmatpush2.bf16.msra.mxu0 %v1843_v24 }
  0x61   :  { %1041 = vmatpush2.bf16.msra.mxu1 %v1846_v25  ;;  %929 = vmatprep.subr.bf16.mxu0 %v1851_v26 }
  0x62   :  { %1536 = vmatmul.mubr.msk.bf16.gmra.mxu0 %vm158_vm0, %v87_v22  ;;  %1042 = vmatprep.subr.bf16.mxu1 %v1854_v27 }
  0x63   :  { %1544 = vmatmul.mubr.msk.bf16.gmra.mxu1 %vm158_vm0, %v87_v22 }
  0x64   :  { %930 = vmatpush2.bf16.msra.mxu0 %v1849_v28  ;;  %v1864_v28 = vld [vmem:[%s2337_s5 + $0x30] sm:$0xff]  }
  0x65   :  { %1043 = vmatpush2.bf16.msra.mxu1 %v1852_v29  ;;  %931 = vmatprep.subr.bf16.mxu0 %v1857_v30 }
  0x66   :  { %1044 = vmatprep.subr.bf16.mxu1 %v1860_v31 }
  0x68   :  { %932 = vmatpush2.bf16.msra.mxu0 %v1855_v32 }
  0x69   :  { %1045 = vmatpush2.bf16.msra.mxu1 %v1858_v33  ;;  %1626 = vmatprep.subr.bf16.mxu0 %v1861_v34  ;;  %v1865_v33 = vld [vmem:[%s2337_s5 + $0x68] sm:$0xff]  }
  0xea   :  { %v217_v42 = vpop.f32.mrf.mxu0 }
  0xeb   :  { %v330_v43 = vpop.f32.mrf.mxu1  ;;  %v218_v56 = vadd.f32 %v217_v42, %v2114_v46 }
  0xec   :  { %v219_v48 = vpop.f32.mrf.mxu0  ;;  %v331_v57 = vadd.f32 %v330_v43, %v2116_v47 }
  0xed   :  { %v332_v49 = vpop.f32.mrf.mxu1  ;;  %v220_v52 = vadd.f32 %v219_v48, %v2109_v44  ;;  %v409_v7 = vmax.f32 %v218_v56, 0.0 }
  0xee   :  { %v221_v50 = vpop.f32.mrf.mxu0  ;;  %v333_v53 = vadd.f32 %v332_v49, %v2111_v45  ;;  %v411_v8 = vmax.f32 %v331_v57, 0.0  ;;  %v1867_v57 = vld [vmem:[%s2337_s5 + $0x60] sm:$0xff]  }
  0xef   :  { %v334_v51 = vpop.f32.mrf.mxu1  ;;  %v222_v54 = vadd.f32 %v221_v50, %v2114_v46  ;;  %v410_v3 = vmax.f32 %v220_v52, 0.0 }
  0xf0   :  { %v335_v55 = vadd.f32 %v334_v51, %v2116_v47  ;;  %v223_v58 = vpop.f32.mrf.mxu0  ;;  %v412_v4 = vmax.f32 %v333_v53, 0.0  ;;  %v1866_v51 = vld [vmem:[%s2337_s5 + $0x28] sm:$0xff]  }
  0xf1   :  { %v336_v59 = vpop.f32.mrf.mxu1  ;;  %v224_v60 = vadd.f32 %v223_v58, %v2109_v44  ;;  %v413_v62 = vmax.f32 %v222_v54, 0.0 }
  0xf2   :  { %v337_v61 = vadd.f32 %v336_v59, %v2111_v45  ;;  %v415_v63 = vmax.f32 %v335_v55, 0.0  ;;  %v227_v0 = vpop.f32.mrf.mxu0 }
  0xf3   :  { %v340_v2 = vpop.f32.mrf.mxu1  ;;  %v414_v5 = vmax.f32 %v224_v60, 0.0  ;;  %v473_v14 = vpack.c.bf16 %v413_v62, %v409_v7  ;;  %v228_v1 = vadd.f32 %v227_v0, %v2114_v46 }
  0xf4   :  { %v416_v6 = vmax.f32 %v337_v61, 0.0  ;;  %v229_v9 = vpop.f32.mrf.mxu0  ;;  %v475_v15 = vpack.c.bf16 %v415_v63, %v411_v8  ;;  %v341_v23 = vadd.f32 %v340_v2, %v2116_v47 }
  0xf5   :  { %v342_v10 = vpop.f32.mrf.mxu1  ;;  %v474_v11 = vpack.c.bf16 %v414_v5, %v410_v3  ;;  %v230_v16 = vadd.f32 %v229_v9, %v2109_v44  ;;  %v417_v41 = vmax.f32 %v228_v1, 0.0  ;;  %v1869_v9 = vld [vmem:[%s2337_s5 + $0x58] sm:$0xff]  }
  0xf6   :  { %v476_v12 = vpack.c.bf16 %v416_v6, %v412_v4  ;;  %v231_v17 = vpop.f32.mrf.mxu0  ;;  %v343_v20 = vadd.f32 %v342_v10, %v2111_v45  ;;  %v419_v42 = vmax.f32 %v341_v23, 0.0  ;;  %v1868_v4 = vld [vmem:[%s2337_s5 + $0x20] sm:$0xff]  }
  0xf7   :  { %v344_v18 = vpop.f32.mrf.mxu1  ;;  %v232_v21 = vadd.f32 %v231_v17, %v2114_v46  ;;  %933 = vmatprep.mubr.bf16.mxu0 %v474_v11  ;;  %v418_v34 = vmax.f32 %v230_v16, 0.0 }
  0xf8   :  { %v345_v22 = vadd.f32 %v344_v18, %v2116_v47  ;;  %1046 = vmatprep.mubr.bf16.mxu1 %v476_v12  ;;  %v233_v24 = vpop.f32.mrf.mxu0  ;;  %934 = vmatmul.mubr.bf16.vlgmr.msra.gmra.mxu0 %v473_v14  ;;  %v420_v35 = vmax.f32 %v343_v20, 0.0  ;;  %v1870_v20 = vld [vmem:[%s2337_s5 + $0x18] sm:$0xff]  }
  0xf9   :  { %v346_v25 = vpop.f32.mrf.mxu1  ;;  %1047 = vmatmul.mubr.bf16.vlgmr.msra.gmra.mxu1 %v475_v15  ;;  %v234_v26 = vadd.f32 %v233_v24, %v2109_v44  ;;  %1627 = vmatpush3.bf16.msra.mxu0 %v1862_v13  ;;  %v421_v29 = vmax.f32 %v232_v21, 0.0 }
  0xfa   :  { %v347_v27 = vadd.f32 %v346_v25, %v2111_v45  ;;  %v423_v30 = vmax.f32 %v345_v22, 0.0  ;;  %v237_v31 = vpop.f32.mrf.mxu0  ;;  %1628 = vmatprep.subr.bf16.mxu0 %v1863_v19  ;;  %v1871_v25 = vld [vmem:[%s2337_s5 + $0x50] sm:$0xff]  }
  0xfb   :  { %v350_v32 = vpop.f32.mrf.mxu1  ;;  %v422_v38 = vmax.f32 %v234_v26, 0.0  ;;  %v477_v52 = vpack.c.bf16 %v421_v29, %v417_v41  ;;  %v238_v61 = vadd.f32 %v237_v31, %v2114_v46 }
  0xfc   :  { %v424_v40 = vmax.f32 %v347_v27, 0.0  ;;  %v239_v43 = vpop.f32.mrf.mxu0  ;;  %v479_v53 = vpack.c.bf16 %v423_v30, %v419_v42  ;;  %v351_v62 = vadd.f32 %v350_v32, %v2116_v47 }
  0xfd   :  { %v352_v48 = vpop.f32.mrf.mxu1  ;;  %v478_v49 = vpack.c.bf16 %v422_v38, %v418_v34  ;;  %1629 = vmatpush3.bf16.msra.mxu0 %v1864_v28  ;;  %v240_v54 = vadd.f32 %v239_v43, %v2109_v44  ;;  %v425_v14 = vmax.f32 %v238_v61, 0.0 }
  0xfe   :  { %v480_v50 = vpack.c.bf16 %v424_v40, %v420_v35  ;;  %v241_v55 = vpop.f32.mrf.mxu0  ;;  %1630 = vmatprep.subr.bf16.mxu0 %v1865_v33  ;;  %v353_v58 = vadd.f32 %v352_v48, %v2111_v45  ;;  %v427_v15 = vmax.f32 %v351_v62, 0.0  ;;  %v1872_v35 = vld [vmem:[%s2337_s5 + $0x10] sm:$0xff]  }
  0xff   :  { %v354_v56 = vpop.f32.mrf.mxu1  ;;  %v242_v59 = vadd.f32 %v241_v55, %v2114_v46  ;;  %943 = vmatprep.mubr.bf16.mxu0 %v478_v49  ;;  %v426_v10 = vmax.f32 %v240_v54, 0.0 }
 0x100   :  { %v355_v60 = vadd.f32 %v354_v56, %v2116_v47  ;;  %1056 = vmatprep.mubr.bf16.mxu1 %v480_v50  ;;  %v243_v63 = vpop.f32.mrf.mxu0  ;;  %944 = vmatmul.mubr.bf16.gmra.mxu0 %v477_v52  ;;  %v428_v11 = vmax.f32 %v353_v58, 0.0 }
 0x101   :  { %v356_v0 = vpop.f32.mrf.mxu1  ;;  %1057 = vmatmul.mubr.bf16.gmra.mxu1 %v479_v53  ;;  %v244_v2 = vadd.f32 %v243_v63, %v2109_v44  ;;  %1631 = vmatpush3.bf16.msra.mxu0 %v1866_v51  ;;  %v429_v5 = vmax.f32 %v242_v59, 0.0 }
 0x102   :  { %v357_v3 = vadd.f32 %v356_v0, %v2111_v45  ;;  %v431_v6 = vmax.f32 %v355_v60, 0.0  ;;  %v247_v7 = vpop.f32.mrf.mxu0  ;;  %1632 = vmatprep.subr.bf16.mxu0 %v1867_v57 }
 0x103   :  { %v360_v8 = vpop.f32.mrf.mxu1  ;;  %v430_v12 = vmax.f32 %v244_v2, 0.0  ;;  %v481_v21 = vpack.c.bf16 %v429_v5, %v425_v14  ;;  %v248_v29 = vadd.f32 %v247_v7, %v2114_v46 }
 0x104   :  { %v432_v13 = vmax.f32 %v357_v3, 0.0  ;;  %v249_v16 = vpop.f32.mrf.mxu0  ;;  %v483_v22 = vpack.c.bf16 %v431_v6, %v427_v15  ;;  %v361_v30 = vadd.f32 %v360_v8, %v2116_v47 }
 0x105   :  { %v362_v17 = vpop.f32.mrf.mxu1  ;;  %v482_v18 = vpack.c.bf16 %v430_v12, %v426_v10  ;;  %1633 = vmatpush3.bf16.msra.mxu0 %v1868_v4  ;;  %v250_v1 = vadd.f32 %v249_v16, %v2109_v44  ;;  %v433_v51 = vmax.f32 %v248_v29, 0.0 }
 0x106   :  { %v484_v19 = vpack.c.bf16 %v432_v13, %v428_v11  ;;  %v251_v23 = vpop.f32.mrf.mxu0  ;;  %1634 = vmatprep.subr.bf16.mxu0 %v1869_v9  ;;  %v363_v26 = vadd.f32 %v362_v17, %v2111_v45  ;;  %v435_v52 = vmax.f32 %v361_v30, 0.0 }
 0x107   :  { %v364_v24 = vpop.f32.mrf.mxu1  ;;  %v252_v27 = vadd.f32 %v251_v23, %v2114_v46  ;;  %953 = vmatprep.mubr.bf16.mxu0 %v482_v18  ;;  %v434_v43 = vmax.f32 %v250_v1, 0.0 }
 0x108   :  { %v365_v28 = vadd.f32 %v364_v24, %v2116_v47  ;;  %1066 = vmatprep.mubr.bf16.mxu1 %v484_v19  ;;  %v253_v31 = vpop.f32.mrf.mxu0  ;;  %954 = vmatmul.mubr.bf16.gmra.mxu0 %v481_v21  ;;  %v436_v48 = vmax.f32 %v363_v26, 0.0 }
 0x109   :  { %v366_v32 = vpop.f32.mrf.mxu1  ;;  %1067 = vmatmul.mubr.bf16.gmra.mxu1 %v483_v22  ;;  %v254_v33 = vadd.f32 %v253_v31, %v2109_v44  ;;  %1635 = vmatpush3.bf16.msra.mxu0 %v1870_v20  ;;  %v437_v38 = vmax.f32 %v252_v27, 0.0 }
 0x10a   :  { %v367_v34 = vadd.f32 %v366_v32, %v2111_v45  ;;  %v439_v40 = vmax.f32 %v365_v28, 0.0  ;;  %v257_v41 = vpop.f32.mrf.mxu0  ;;  %1636 = vmatprep.subr.bf16.mxu0 %v1871_v25 }
 0x10b   :  { %v370_v42 = vpop.f32.mrf.mxu1  ;;  %v438_v49 = vmax.f32 %v254_v33, 0.0  ;;  %v485_v57 = vpack.c.bf16 %v437_v38, %v433_v51  ;;  %v258_v2 = vadd.f32 %v257_v41, %v2114_v46 }
 0x10c   :  { %v440_v50 = vmax.f32 %v367_v34, 0.0  ;;  %v259_v53 = vpop.f32.mrf.mxu0  ;;  %v487_v58 = vpack.c.bf16 %v439_v40, %v435_v52  ;;  %v371_v3 = vadd.f32 %v370_v42, %v2116_v47 }
 0x10d   :  { %v372_v54 = vpop.f32.mrf.mxu1  ;;  %v486_v55 = vpack.c.bf16 %v438_v49, %v434_v43  ;;  %1637 = vmatpush3.bf16.msra.mxu0 %v1872_v35  ;;  %v260_v59 = vadd.f32 %v259_v53, %v2109_v44  ;;  %v441_v16 = vmax.f32 %v258_v2, 0.0 }
 0x10e   :  { %v488_v56 = vpack.c.bf16 %v440_v50, %v436_v48  ;;  %v261_v60 = vpop.f32.mrf.mxu0  ;;  %v373_v62 = vadd.f32 %v372_v54, %v2111_v45  ;;  %v443_v17 = vmax.f32 %v371_v3, 0.0 }
 0x10f   :  { %v374_v61 = vpop.f32.mrf.mxu1  ;;  %v262_v63 = vadd.f32 %v261_v60, %v2114_v46  ;;  %963 = vmatprep.mubr.bf16.mxu0 %v486_v55  ;;  %v442_v12 = vmax.f32 %v260_v59, 0.0 }
 0x110   :  { %v375_v0 = vadd.f32 %v374_v61, %v2116_v47  ;;  %1076 = vmatprep.mubr.bf16.mxu1 %v488_v56  ;;  %v263_v4 = vpop.f32.mrf.mxu0  ;;  %964 = vmatmul.mubr.bf16.gmra.mxu0 %v485_v57  ;;  %v444_v13 = vmax.f32 %v373_v62, 0.0 }
 0x111   :  { %v376_v5 = vpop.f32.mrf.mxu1  ;;  %1077 = vmatmul.mubr.bf16.gmra.mxu1 %v487_v58  ;;  %v264_v6 = vadd.f32 %v263_v4, %v2109_v44  ;;  %v445_v8 = vmax.f32 %v262_v63, 0.0 }
 0x112   :  { %v377_v7 = vadd.f32 %v376_v5, %v2111_v45  ;;  %v447_v9 = vmax.f32 %v375_v0, 0.0  ;;  %v267_v10 = vpop.f32.mrf.mxu0 }
 0x113   :  { %v380_v11 = vpop.f32.mrf.mxu1  ;;  %v446_v14 = vmax.f32 %v264_v6, 0.0  ;;  %v489_v22 = vpack.c.bf16 %v445_v8, %v441_v16  ;;  %v268_v29 = vadd.f32 %v267_v10, %v2114_v46 }
 0x114   :  { %v448_v15 = vmax.f32 %v377_v7, 0.0  ;;  %v269_v18 = vpop.f32.mrf.mxu0  ;;  %v491_v1 = vpack.c.bf16 %v447_v9, %v443_v17  ;;  %v381_v30 = vadd.f32 %v380_v11, %v2116_v47 }
 0x115   :  { %v382_v19 = vpop.f32.mrf.mxu1  ;;  %v490_v20 = vpack.c.bf16 %v446_v14, %v442_v12  ;;  %v270_v23 = vadd.f32 %v269_v18, %v2109_v44  ;;  %v449_v50 = vmax.f32 %v268_v29, 0.0 }
 0x116   :  { %v492_v21 = vpack.c.bf16 %v448_v15, %v444_v13  ;;  %v271_v24 = vpop.f32.mrf.mxu0  ;;  %v383_v26 = vadd.f32 %v382_v19, %v2111_v45  ;;  %v451_v51 = vmax.f32 %v381_v30, 0.0 }
 0x117   :  { %v384_v25 = vpop.f32.mrf.mxu1  ;;  %v272_v27 = vadd.f32 %v271_v24, %v2114_v46  ;;  %973 = vmatprep.mubr.bf16.mxu0 %v490_v20  ;;  %v450_v42 = vmax.f32 %v270_v23, 0.0 }
 0x118   :  { %v385_v28 = vadd.f32 %v384_v25, %v2116_v47  ;;  %1086 = vmatprep.mubr.bf16.mxu1 %v492_v21  ;;  %v273_v31 = vpop.f32.mrf.mxu0  ;;  %974 = vmatmul.mubr.bf16.gmra.mxu0 %v489_v22  ;;  %v452_v43 = vmax.f32 %v383_v26, 0.0 }
 0x119   :  { %v386_v32 = vpop.f32.mrf.mxu1  ;;  %1087 = vmatmul.mubr.bf16.gmra.mxu1 %v491_v1  ;;  %v274_v33 = vadd.f32 %v273_v31, %v2109_v44  ;;  %v453_v35 = vmax.f32 %v272_v27, 0.0 }
 0x11a   :  { %v387_v34 = vadd.f32 %v386_v32, %v2111_v45  ;;  %v455_v38 = vmax.f32 %v385_v28, 0.0  ;;  %v277_v40 = vpop.f32.mrf.mxu0 }
 0x11b   :  { %v390_v41 = vpop.f32.mrf.mxu1  ;;  %v454_v48 = vmax.f32 %v274_v33, 0.0  ;;  %v493_v56 = vpack.c.bf16 %v453_v35, %v449_v50  ;;  %v278_v0 = vadd.f32 %v277_v40, %v2114_v46 }
 0x11c   :  { %v456_v49 = vmax.f32 %v387_v34, 0.0  ;;  %v279_v52 = vpop.f32.mrf.mxu0  ;;  %v495_v57 = vpack.c.bf16 %v455_v38, %v451_v51  ;;  %v391_v2 = vadd.f32 %v390_v41, %v2116_v47  ;;  %v1875_v51 = vld [vmem:[%s2337_s5 + $0x40] sm:$0xff]  }
 0x11d   :  { %v392_v53 = vpop.f32.mrf.mxu1  ;;  %v494_v54 = vpack.c.bf16 %v454_v48, %v450_v42  ;;  %v280_v58 = vadd.f32 %v279_v52, %v2109_v44  ;;  %v457_v15 = vmax.f32 %v278_v0, 0.0  ;;  %v1876_v52 = vld [vmem:[%s2337_s5] sm:$0xff]  }
 0x11e   :  { %v496_v55 = vpack.c.bf16 %v456_v49, %v452_v43  ;;  %v281_v59 = vpop.f32.mrf.mxu0  ;;  %v393_v61 = vadd.f32 %v392_v53, %v2111_v45  ;;  %v459_v16 = vmax.f32 %v391_v2, 0.0  ;;  %v569_v53 = vld [vmem:[%s2336_s4] sm:$0x3] }
 0x11f   :  { %v394_v60 = vpop.f32.mrf.mxu1  ;;  %v282_v62 = vadd.f32 %v281_v59, %v2114_v46  ;;  %983 = vmatprep.mubr.bf16.mxu0 %v494_v54  ;;  %v458_v11 = vmax.f32 %v280_v58, 0.0  ;;  %v2232_v54 = vrot.slane %v569_v53, %v104_v37 }
 0x120   :  { %v395_v63 = vadd.f32 %v394_v60, %v2116_v47  ;;  %1096 = vmatprep.mubr.bf16.mxu1 %v496_v55  ;;  %v283_v3 = vpop.f32.mrf.mxu0  ;;  %984 = vmatmul.mubr.bf16.gmra.mxu0 %v493_v56  ;;  %v460_v12 = vmax.f32 %v393_v61, 0.0  ;;  %v2235_v55 = vrot.slane %v569_v53, %v2101_v39 }
 0x121   :  { %v396_v4 = vpop.f32.mrf.mxu1  ;;  %1097 = vmatmul.mubr.bf16.gmra.mxu1 %v495_v57  ;;  %v284_v5 = vadd.f32 %v283_v3, %v2109_v44  ;;  %v461_v7 = vmax.f32 %v282_v62, 0.0 }
 0x122   :  { %v397_v6 = vadd.f32 %v396_v4, %v2111_v45  ;;  %v463_v8 = vmax.f32 %v395_v63, 0.0  ;;  %v287_v9 = vpop.f32.mrf.mxu0 }
 0x123   :  { %v400_v10 = vpop.f32.mrf.mxu1  ;;  %v462_v13 = vmax.f32 %v284_v5, 0.0  ;;  %v497_v21 = vpack.c.bf16 %v461_v7, %v457_v15  ;;  %v288_v28 = vadd.f32 %v287_v9, %v2114_v46 }
 0x124   :  { %v464_v14 = vmax.f32 %v397_v6, 0.0  ;;  %v289_v17 = vpop.f32.mrf.mxu0  ;;  %v499_v22 = vpack.c.bf16 %v463_v8, %v459_v16  ;;  %v401_v29 = vadd.f32 %v400_v10, %v2116_v47 }
 0x125   :  { %v402_v18 = vpop.f32.mrf.mxu1  ;;  %v498_v19 = vpack.c.bf16 %v462_v13, %v458_v11  ;;  %v290_v1 = vadd.f32 %v289_v17, %v2109_v44  ;;  %v465_v43 = vmax.f32 %v288_v28, 0.0 }
 0x126   :  { %v500_v20 = vpack.c.bf16 %v464_v14, %v460_v12  ;;  %v291_v23 = vpop.f32.mrf.mxu0  ;;  %v403_v25 = vadd.f32 %v402_v18, %v2111_v45  ;;  %v467_v48 = vmax.f32 %v401_v29, 0.0 }
 0x127   :  { %v404_v24 = vpop.f32.mrf.mxu1  ;;  %v292_v26 = vadd.f32 %v291_v23, %v2114_v46  ;;  %993 = vmatprep.mubr.bf16.mxu0 %v498_v19  ;;  %v466_v38 = vmax.f32 %v290_v1, 0.0 }
 0x128   :  { %v405_v27 = vadd.f32 %v404_v24, %v2116_v47  ;;  %1106 = vmatprep.mubr.bf16.mxu1 %v500_v20  ;;  %v293_v30 = vpop.f32.mrf.mxu0  ;;  %994 = vmatmul.mubr.bf16.gmra.mxu0 %v497_v21  ;;  %v468_v40 = vmax.f32 %v403_v25, 0.0 }
 0x129   :  { %v406_v31 = vpop.f32.mrf.mxu1  ;;  %1107 = vmatmul.mubr.bf16.gmra.mxu1 %v499_v22  ;;  %v294_v32 = vadd.f32 %v293_v30, %v2109_v44  ;;  %v469_v34 = vmax.f32 %v292_v26, 0.0  ;;  %v1873_v44 = vld [vmem:[%s2337_s5 + $0x48] sm:$0xff]  }
 0x12a   :  { %v407_v33 = vadd.f32 %v406_v31, %v2111_v45  ;;  %v471_v35 = vmax.f32 %v405_v27, 0.0  ;;  %v1874_v45 = vld [vmem:[%s2337_s5 + $0x8] sm:$0xff]   ;;  %1638 = vmatprep.subr.bf16.mxu0 %v1873_v44 }
 0x12b   :  { %v470_v41 = vmax.f32 %v294_v32, 0.0  ;;  %v501_v50 = vpack.c.bf16 %v469_v34, %v465_v43  ;;  %1639 = vmatpush3.bf16.msra.mxu0 %v1874_v45 }
 0x12c   :  { %v472_v42 = vmax.f32 %v407_v33, 0.0  ;;  %v503_v47 = vpack.c.bf16 %v471_v35, %v467_v48  ;;  %1640 = vmatprep.subr.bf16.mxu0 %v1875_v51 }
 0x12d   :  { %v502_v49 = vpack.c.bf16 %v470_v41, %v466_v38 }
 0x12e   :  { %v504_v46 = vpack.c.bf16 %v472_v42, %v468_v40 }
 0x12f   :  { %1003 = vmatprep.mubr.bf16.mxu0 %v502_v49  ;;  %1641 = vmatpush3.bf16.msra.mxu0 %v1876_v52 }
 0x130   :  { %1116 = vmatprep.mubr.bf16.mxu1 %v504_v46  ;;  %1004 = vmatmul.mubr.bf16.gmra.mxu0 %v501_v50 }
 0x131   :  { %1117 = vmatmul.mubr.bf16.gmra.mxu1 %v503_v47 }
 0x1b8   :  { %v935_v56 = vpop.f32.mrf.mxu0 }
 0x1b9   :  { %v1048_v57 = vpop.f32.mrf.mxu1  ;;  %v936_v61 = vadd.f32 %v935_v56, %v2235_v55 }
 0x1ba   :  { %v937_v58 = vpop.f32.mrf.mxu0 }
 0x1bb   :  { %v1050_v59 = vpop.f32.mrf.mxu1  ;;  %v938_v60 = vadd.f32 %v937_v58, %v2232_v54  ;;  %v1049_v5 = vadd.f32 %v1048_v57, %v936_v61 }
 0x1bc   :  { %v939_v62 = vpop.f32.mrf.mxu0 }
 0x1bd   :  { %v1052_v63 = vpop.f32.mrf.mxu1  ;;  %v940_v0 = vadd.f32 %v939_v62, %v2235_v55  ;;  %v1051_v36 = vadd.f32 %v1050_v59, %v938_v60  ;;  %v1127_v15 = vmax.f32 %v1049_v5, 0.0 }
 0x1be   :  { %v941_v2 = vpop.f32.mrf.mxu0 }
 0x1bf   :  { %v1054_v3 = vpop.f32.mrf.mxu1  ;;  %v1053_v37 = vadd.f32 %v1052_v63, %v940_v0  ;;  %v942_v4 = vadd.f32 %v941_v2, %v2232_v54  ;;  %v1128_v12 = vmax.f32 %v1051_v36, 0.0 }
 0x1c0   :  { %v945_v6 = vpop.f32.mrf.mxu0 }
 0x1c1   :  { %v1058_v7 = vpop.f32.mrf.mxu1  ;;  %v1055_v8 = vadd.f32 %v1054_v3, %v942_v4  ;;  %v1129_v9 = vmax.f32 %v1053_v37, 0.0  ;;  %v946_v16 = vadd.f32 %v945_v6, %v2235_v55 }
 0x1c2   :  { %v947_v10 = vpop.f32.mrf.mxu0 }
 0x1c3   :  { %v1060_v11 = vpop.f32.mrf.mxu1  ;;  %v1130_v13 = vmax.f32 %v1055_v8, 0.0  ;;  %v948_v14 = vadd.f32 %v947_v10, %v2232_v54  ;;  %v1159_v21 = vpack.c.bf16 %v1129_v9, %v1127_v15  ;;  %v1059_v26 = vadd.f32 %v1058_v7, %v946_v16 }
 0x1c4   :  { %v949_v17 = vpop.f32.mrf.mxu0 }
 0x1c5   :  { %v1062_v18 = vpop.f32.mrf.mxu1  ;;  %v1160_v19 = vpack.c.bf16 %v1130_v13, %v1128_v12  ;;  %v950_v20 = vadd.f32 %v949_v17, %v2235_v55  ;;  %v1061_v23 = vadd.f32 %v1060_v11, %v948_v14  ;;  %v1131_v38 = vmax.f32 %v1059_v26, 0.0 }
 0x1c6   :  { %v951_v22 = vpop.f32.mrf.mxu0 }
 0x1c7   :  { %v1064_v1 = vpop.f32.mrf.mxu1  ;;  %v1063_v24 = vadd.f32 %v1062_v18, %v950_v20  ;;  %v952_v25 = vadd.f32 %v951_v22, %v2232_v54  ;;  %1342 = vmatprep.mubr.bf16.mxu0 %v1160_v19  ;;  %v1132_v33 = vmax.f32 %v1061_v23, 0.0 }
 0x1c8   :  { %v955_v27 = vpop.f32.mrf.mxu0  ;;  %1343 = vmatmul.mubr.bf16.vlgmr.msra.gmra.mxu0 %v1159_v21 }
 0x1c9   :  { %v1068_v28 = vpop.f32.mrf.mxu1  ;;  %v1065_v29 = vadd.f32 %v1064_v1, %v952_v25  ;;  %v1133_v30 = vmax.f32 %v1063_v24, 0.0  ;;  %v956_v40 = vadd.f32 %v955_v27, %v2235_v55 }
 0x1ca   :  { %v957_v31 = vpop.f32.mrf.mxu0 }
 0x1cb   :  { %v1070_v32 = vpop.f32.mrf.mxu1  ;;  %v1134_v34 = vmax.f32 %v1065_v29, 0.0  ;;  %v958_v35 = vadd.f32 %v957_v31, %v2232_v54  ;;  %v1161_v49 = vpack.c.bf16 %v1133_v30, %v1131_v38  ;;  %v1069_v51 = vadd.f32 %v1068_v28, %v956_v40 }
 0x1cc   :  { %v959_v41 = vpop.f32.mrf.mxu0 }
 0x1cd   :  { %v1072_v42 = vpop.f32.mrf.mxu1  ;;  %v1162_v43 = vpack.c.bf16 %v1134_v34, %v1132_v33  ;;  %v960_v48 = vadd.f32 %v959_v41, %v2235_v55  ;;  %v1071_v47 = vadd.f32 %v1070_v32, %v958_v35  ;;  %v1135_v63 = vmax.f32 %v1069_v51, 0.0 }
 0x1ce   :  { %v961_v46 = vpop.f32.mrf.mxu0 }
 0x1cf   :  { %v1074_v50 = vpop.f32.mrf.mxu1  ;;  %v1073_v44 = vadd.f32 %v1072_v42, %v960_v48  ;;  %v962_v45 = vadd.f32 %v961_v46, %v2232_v54  ;;  %1350 = vmatprep.mubr.bf16.mxu0 %v1162_v43  ;;  %v1136_v60 = vmax.f32 %v1071_v47, 0.0 }
 0x1d0   :  { %v965_v52 = vpop.f32.mrf.mxu0  ;;  %1351 = vmatmul.mubr.bf16.gmra.mxu0 %v1161_v49 }
 0x1d1   :  { %v1078_v53 = vpop.f32.mrf.mxu1  ;;  %v1075_v56 = vadd.f32 %v1074_v50, %v962_v45  ;;  %v1137_v57 = vmax.f32 %v1073_v44, 0.0  ;;  %v966_v0 = vadd.f32 %v965_v52, %v2235_v55 }
 0x1d2   :  { %v967_v58 = vpop.f32.mrf.mxu0 }
 0x1d3   :  { %v1080_v59 = vpop.f32.mrf.mxu1  ;;  %v1138_v61 = vmax.f32 %v1075_v56, 0.0  ;;  %v968_v62 = vadd.f32 %v967_v58, %v2232_v54  ;;  %v1163_v4 = vpack.c.bf16 %v1137_v57, %v1135_v63  ;;  %v1079_v10 = vadd.f32 %v1078_v53, %v966_v0 }
 0x1d4   :  { %v969_v2 = vpop.f32.mrf.mxu0 }
 0x1d5   :  { %v1082_v3 = vpop.f32.mrf.mxu1  ;;  %v1164_v36 = vpack.c.bf16 %v1138_v61, %v1136_v60  ;;  %v970_v37 = vadd.f32 %v969_v2, %v2235_v55  ;;  %v1081_v7 = vadd.f32 %v1080_v59, %v968_v62  ;;  %v1139_v20 = vmax.f32 %v1079_v10, 0.0 }
 0x1d6   :  { %v971_v5 = vpop.f32.mrf.mxu0 }
 0x1d7   :  { %v1084_v6 = vpop.f32.mrf.mxu1  ;;  %v1083_v8 = vadd.f32 %v1082_v3, %v970_v37  ;;  %v972_v9 = vadd.f32 %v971_v5, %v2232_v54  ;;  %1358 = vmatprep.mubr.bf16.mxu0 %v1164_v36  ;;  %v1140_v17 = vmax.f32 %v1081_v7, 0.0 }
 0x1d8   :  { %v975_v11 = vpop.f32.mrf.mxu0  ;;  %1359 = vmatmul.mubr.bf16.gmra.mxu0 %v1163_v4 }
 0x1d9   :  { %v1088_v12 = vpop.f32.mrf.mxu1  ;;  %v1085_v13 = vadd.f32 %v1084_v6, %v972_v9  ;;  %v1141_v14 = vmax.f32 %v1083_v8, 0.0  ;;  %v976_v21 = vadd.f32 %v975_v11, %v2235_v55 }
 0x1da   :  { %v977_v15 = vpop.f32.mrf.mxu0 }
 0x1db   :  { %v1090_v16 = vpop.f32.mrf.mxu1  ;;  %v1142_v18 = vmax.f32 %v1085_v13, 0.0  ;;  %v978_v19 = vadd.f32 %v977_v15, %v2232_v54  ;;  %v1165_v25 = vpack.c.bf16 %v1141_v14, %v1139_v20  ;;  %v1089_v31 = vadd.f32 %v1088_v12, %v976_v21 }
 0x1dc   :  { %v979_v22 = vpop.f32.mrf.mxu0 }
 0x1dd   :  { %v1092_v1 = vpop.f32.mrf.mxu1  ;;  %v1166_v23 = vpack.c.bf16 %v1142_v18, %v1140_v17  ;;  %v980_v24 = vadd.f32 %v979_v22, %v2235_v55  ;;  %v1091_v28 = vadd.f32 %v1090_v16, %v978_v19  ;;  %v1143_v48 = vmax.f32 %v1089_v31, 0.0 }
 0x1de   :  { %v981_v26 = vpop.f32.mrf.mxu0 }
 0x1df   :  { %v1094_v27 = vpop.f32.mrf.mxu1  ;;  %v1093_v29 = vadd.f32 %v1092_v1, %v980_v24  ;;  %v982_v30 = vadd.f32 %v981_v26, %v2232_v54  ;;  %1366 = vmatprep.mubr.bf16.mxu0 %v1166_v23  ;;  %v1144_v41 = vmax.f32 %v1091_v28, 0.0 }
 0x1e0   :  { %v985_v32 = vpop.f32.mrf.mxu0  ;;  %1367 = vmatmul.mubr.bf16.gmra.mxu0 %v1165_v25 }
 0x1e1   :  { %v1098_v33 = vpop.f32.mrf.mxu1  ;;  %v1095_v34 = vadd.f32 %v1094_v27, %v982_v30  ;;  %v1145_v35 = vmax.f32 %v1093_v29, 0.0  ;;  %v986_v49 = vadd.f32 %v985_v32, %v2235_v55 }
 0x1e2   :  { %v987_v38 = vpop.f32.mrf.mxu0 }
 0x1e3   :  { %v1100_v40 = vpop.f32.mrf.mxu1  ;;  %v1146_v42 = vmax.f32 %v1095_v34, 0.0  ;;  %v988_v43 = vadd.f32 %v987_v38, %v2232_v54  ;;  %v1167_v45 = vpack.c.bf16 %v1145_v35, %v1143_v48  ;;  %v1099_v58 = vadd.f32 %v1098_v33, %v986_v49 }
 0x1e4   :  { %v989_v46 = vpop.f32.mrf.mxu0 }
 0x1e5   :  { %v1102_v50 = vpop.f32.mrf.mxu1  ;;  %v1168_v47 = vpack.c.bf16 %v1146_v42, %v1144_v41  ;;  %v990_v44 = vadd.f32 %v989_v46, %v2235_v55  ;;  %v1101_v53 = vadd.f32 %v1100_v40, %v988_v43  ;;  %v1147_v37 = vmax.f32 %v1099_v58, 0.0 }
 0x1e6   :  { %v991_v51 = vpop.f32.mrf.mxu0 }
 0x1e7   :  { %v1104_v52 = vpop.f32.mrf.mxu1  ;;  %v1103_v56 = vadd.f32 %v1102_v50, %v990_v44  ;;  %v992_v57 = vadd.f32 %v991_v51, %v2232_v54  ;;  %1374 = vmatprep.mubr.bf16.mxu0 %v1168_v47  ;;  %v1148_v2 = vmax.f32 %v1101_v53, 0.0 }
 0x1e8   :  { %v995_v59 = vpop.f32.mrf.mxu0  ;;  %1375 = vmatmul.mubr.bf16.gmra.mxu0 %v1167_v45  ;;  %v1424_v45 = vld [vmem:[#allocation2] sm:$0x1] }
 0x1e9   :  { %v1108_v60 = vpop.f32.mrf.mxu1  ;;  %v1105_v61 = vadd.f32 %v1104_v52, %v992_v57  ;;  %v1149_v62 = vmax.f32 %v1103_v56, 0.0  ;;  %v996_v4 = vadd.f32 %v995_v59, %v2235_v55  ;;  %1427 = vperm.xlu0 %1752, %v1424_v45  }
 0x1ea   :  { %v997_v63 = vpop.f32.mrf.mxu0 }
 0x1eb   :  { %v1110_v0 = vpop.f32.mrf.mxu1  ;;  %v1150_v3 = vmax.f32 %v1105_v61, 0.0  ;;  %v998_v36 = vadd.f32 %v997_v63, %v2232_v54  ;;  %v1169_v9 = vpack.c.bf16 %v1149_v62, %v1147_v37  ;;  %v1109_v15 = vadd.f32 %v1108_v60, %v996_v4 }
 0x1ec   :  { %v999_v5 = vpop.f32.mrf.mxu0 }
 0x1ed   :  { %v1112_v6 = vpop.f32.mrf.mxu1  ;;  %v1170_v7 = vpack.c.bf16 %v1150_v3, %v1148_v2  ;;  %v1000_v8 = vadd.f32 %v999_v5, %v2235_v55  ;;  %v1111_v12 = vadd.f32 %v1110_v0, %v998_v36  ;;  %v1151_v24 = vmax.f32 %v1109_v15, 0.0 }
 0x1ee   :  { %v1001_v10 = vpop.f32.mrf.mxu0 }
 0x1ef   :  { %v1114_v11 = vpop.f32.mrf.mxu1  ;;  %v1113_v13 = vadd.f32 %v1112_v6, %v1000_v8  ;;  %v1002_v14 = vadd.f32 %v1001_v10, %v2232_v54  ;;  %1382 = vmatprep.mubr.bf16.mxu0 %v1170_v7  ;;  %v1152_v22 = vmax.f32 %v1111_v12, 0.0 }
 0x1f0   :  { %v1005_v16 = vpop.f32.mrf.mxu0  ;;  %1383 = vmatmul.mubr.bf16.gmra.mxu0 %v1169_v9 }
 0x1f1   :  { %v1118_v17 = vpop.f32.mrf.mxu1  ;;  %v1115_v18 = vadd.f32 %v1114_v11, %v1002_v14  ;;  %v1153_v19 = vmax.f32 %v1113_v13, 0.0  ;;  %v1006_v25 = vadd.f32 %v1005_v16, %v2235_v55 }
 0x1f2   :  { %v1007_v20 = vpop.f32.mrf.mxu0 }
 0x1f3   :  { %v1120_v21 = vpop.f32.mrf.mxu1  ;;  %v1154_v1 = vmax.f32 %v1115_v18, 0.0  ;;  %v1008_v23 = vadd.f32 %v1007_v20, %v2232_v54  ;;  %v1171_v30 = vpack.c.bf16 %v1153_v19, %v1151_v24  ;;  %v1119_v35 = vadd.f32 %v1118_v17, %v1006_v25  ;;  %v2286_v25 = vld [vmem:[%s2338_s6] ss:$0 sm:$0xff] }
 0x1f4   :  { %v1009_v26 = vpop.f32.mrf.mxu0 }
 0x1f5   :  { %v1122_v27 = vpop.f32.mrf.mxu1  ;;  %v1172_v28 = vpack.c.bf16 %v1154_v1, %v1152_v22  ;;  %v1010_v29 = vadd.f32 %v1009_v26, %v2235_v55  ;;  %v1121_v32 = vadd.f32 %v1120_v21, %v1008_v23  ;;  %v1155_v48 = vmax.f32 %v1119_v35, 0.0 }
 0x1f6   :  { %v1011_v31 = vpop.f32.mrf.mxu0  ;;  %v1950_v55 = vmov 0.0  }
 0x1f7   :  { %v1123_v33 = vadd.f32 %v1122_v27, %v1010_v29  ;;  %v1012_v34 = vadd.f32 %v1011_v31, %v2232_v54  ;;  %1390 = vmatprep.mubr.bf16.mxu0 %v1172_v28  ;;  %v1124_v38 = vpop.f32.mrf.mxu1  ;;  %v1156_v42 = vmax.f32 %v1121_v32, 0.0  ;;  %1707 = vmatprep.subr.mxu1 %v1950_v55 }
 0x1f8   :  { %1391 = vmatmul.mubr.bf16.gmra.mxu0 %v1171_v30  ;;  %1739 = vmatprep.mubr.msk.f32.mxu1 %vm1951_vm1, %v1950_v55 }
 0x1f9   :  { %v1125_v40 = vadd.f32 %v1124_v38, %v1012_v34  ;;  %v1157_v41 = vmax.f32 %v1123_v33, 0.0 }
 0x1fb   :  { %v1158_v43 = vmax.f32 %v1125_v40, 0.0  ;;  %v1173_v46 = vpack.c.bf16 %v1157_v41, %v1155_v48 }
 0x1fd   :  { %v1174_v49 = vpack.c.bf16 %v1158_v43, %v1156_v42 }
 0x1ff   :  { %1398 = vmatprep.mubr.bf16.mxu0 %v1174_v49 }
 0x200   :  { %1399 = vmatmul.mubr.bf16.gmra.mxu0 %v1173_v46 }
 0x288   :  { %v1642_v50 = vpop.f32.mrf.mxu0 }
 0x28a   :  { %v1643_v47 = vpop.f32.mrf.mxu0 }
 0x28b   :  { %v2271_v54 = vadd.f32 %v1643_v47, %v1642_v50 }
 0x28c   :  { %v1645_v44 = vpop.f32.mrf.mxu0 }
 0x28e   :  { %v1646_v51 = vpop.f32.mrf.mxu0 }
 0x28f   :  { %v2273_v52 = vadd.f32 %v1646_v51, %v1645_v44 }
 0x290   :  { %v1648_v53 = vpop.f32.mrf.mxu0 }
 0x292   :  { %v1649_v56 = vpop.f32.mrf.mxu0 }
 0x293   :  { %v2275_v57 = vadd.f32 %v1649_v56, %v1648_v53 }
 0x294   :  { %v1651_v58 = vpop.f32.mrf.mxu0 }
 0x296   :  { %v1652_v59 = vpop.f32.mrf.mxu0 }
 0x297   :  { %v2277_v60 = vadd.f32 %v1652_v59, %v1651_v58 }
 0x298   :  { %v1654_v61 = vpop.f32.mrf.mxu0 }
 0x29a   :  { %v1655_v62 = vpop.f32.mrf.mxu0 }
 0x29b   :  { %v2279_v63 = vadd.f32 %v1655_v62, %v1654_v61 }
 0x29c   :  { %v1657_v0 = vpop.f32.mrf.mxu0 }
 0x29d   :  { %v1361_v61 = vadd.f32 %v2279_v63, %v2286_v25  ;;  %v1348_v63 = vadd.f32 %v2273_v52, %v2286_v25 }
 0x29e   :  { %v1658_v2 = vpop.f32.mrf.mxu0 }
 0x29f   :  { %v2281_v3 = vadd.f32 %v1658_v2, %v1657_v0  ;;  %v1356_v0 = vadd.f32 %v2277_v60, %v2286_v25  ;;  %v1411_v2 = vmax.f32 %v1361_v61, 0.0  ;;  %v1345_v60 = vadd.f32 %v2271_v54, %v2286_v25 }
 0x2a0   :  { %v1660_v36 = vpop.f32.mrf.mxu0 }
 0x2a1   :  { %v1364_v58 = vadd.f32 %v2281_v3, %v2286_v25  ;;  %v1353_v3 = vadd.f32 %v2275_v57, %v2286_v25  ;;  %v1423_v57 = vld [vmem:[%s2339_s7] sm:$0x1] }
 0x2a2   :  { %v1661_v37 = vpop.f32.mrf.mxu0 }
 0x2a3   :  { %v1662_v4 = vadd.f32 %v1661_v37, %v1660_v36  ;;  %v1412_v62 = vmax.f32 %v1364_v58, 0.0  ;;  %v1410_v36 = vmax.f32 %v1356_v0, 0.0  ;;  %v1409_v37 = vmax.f32 %v1353_v3, 0.0 }
 0x2a4   :  { %v1663_v5 = vpop.f32.mrf.mxu0 }
 0x2a5   :  { %v1369_v53 = vadd.f32 %v1662_v4, %v2286_v25  ;;  %v1408_v4 = vmax.f32 %v1348_v63, 0.0 }
 0x2a6   :  { %v1664_v6 = vpop.f32.mrf.mxu0 }
 0x2a7   :  { %v1665_v7 = vadd.f32 %v1664_v6, %v1663_v5  ;;  %v1413_v59 = vmax.f32 %v1369_v53, 0.0  ;;  %v1407_v5 = vmax.f32 %v1345_v60, 0.0  ;;  %v1428_v6 = vpop.permute.xlu0 %1427 }
 0x2a8   :  { %v1666_v8 = vpop.f32.mrf.mxu0  ;;  %v1433_v52 = vrot.slane %v1428_v6, %v2101_v39 }
 0x2a9   :  { %v1372_v45 = vadd.f32 %v1665_v7, %v2286_v25 }
 0x2aa   :  { %v1667_v9 = vpop.f32.mrf.mxu0 }
 0x2ab   :  { %v1668_v49 = vadd.f32 %v1667_v9, %v1666_v8  ;;  %v1414_v56 = vmax.f32 %v1372_v45, 0.0 }
 0x2ac   :  { %v1669_v10 = vpop.f32.mrf.mxu0 }
 0x2ad   :  { %v1377_v47 = vadd.f32 %v1668_v49, %v2286_v25 }
 0x2ae   :  { %v1670_v11 = vpop.f32.mrf.mxu0 }
 0x2af   :  { %v1671_v42 = vadd.f32 %v1670_v11, %v1669_v10  ;;  %v1415_v51 = vmax.f32 %v1377_v47, 0.0 }
 0x2b0   :  { %v1672_v12 = vpop.f32.mrf.mxu0 }
 0x2b1   :  { %v1380_v46 = vadd.f32 %v1671_v42, %v2286_v25 }
 0x2b2   :  { %v1673_v13 = vpop.f32.mrf.mxu0 }
 0x2b3   :  { %v1674_v38 = vadd.f32 %v1673_v13, %v1672_v12  ;;  %v1416_v44 = vmax.f32 %v1380_v46, 0.0 }
 0x2b4   :  { %v1675_v14 = vpop.f32.mrf.mxu0 }
 0x2b5   :  { %v1385_v43 = vadd.f32 %v1674_v38, %v2286_v25 }
 0x2b6   :  { %v1676_v15 = vpop.f32.mrf.mxu0 }
 0x2b7   :  { %v1677_v33 = vadd.f32 %v1676_v15, %v1675_v14  ;;  %v1417_v50 = vmax.f32 %v1385_v43, 0.0 }
 0x2b8   :  { %v1678_v16 = vpop.f32.mrf.mxu0 }
 0x2b9   :  { %v1388_v40 = vadd.f32 %v1677_v33, %v2286_v25 }
 0x2ba   :  { %v1679_v17 = vpop.f32.mrf.mxu0 }
 0x2bb   :  { %v1680_v30 = vadd.f32 %v1679_v17, %v1678_v16  ;;  %v1418_v48 = vmax.f32 %v1388_v40, 0.0 }
 0x2bc   :  { %v1681_v18 = vpop.f32.mrf.mxu0 }
 0x2bd   :  { %v1393_v34 = vadd.f32 %v1680_v30, %v2286_v25 }
 0x2be   :  { %v1682_v19 = vpop.f32.mrf.mxu0 }
 0x2bf   :  { %v1683_v27 = vadd.f32 %v1682_v19, %v1681_v18  ;;  %v1419_v41 = vmax.f32 %v1393_v34, 0.0 }
 0x2c0   :  { %v1684_v20 = vpop.f32.mrf.mxu0 }
 0x2c1   :  { %v1396_v31 = vadd.f32 %v1683_v27, %v2286_v25 }
 0x2c2   :  { %v1685_v21 = vpop.f32.mrf.mxu0 }
 0x2c3   :  { %v1686_v23 = vadd.f32 %v1685_v21, %v1684_v20  ;;  %v1420_v35 = vmax.f32 %v1396_v31, 0.0 }
 0x2c4   :  { %v1687_v22 = vpop.f32.mrf.mxu0 }
 0x2c5   :  { %v1401_v28 = vadd.f32 %v1686_v23, %v2286_v25 }
 0x2c6   :  { %v1688_v1 = vpop.f32.mrf.mxu0 }
 0x2c7   :  { %v1689_v24 = vadd.f32 %v1688_v1, %v1687_v22  ;;  %v1421_v32 = vmax.f32 %v1401_v28, 0.0 }
 0x2c9   :  { %v1404_v26 = vadd.f32 %v1689_v24, %v2286_v25 }
 0x2cb   :  { %v1422_v29 = vmax.f32 %v1404_v26, 0.0 }
 0x2cd   :  { %1708 = vmatpush3.xpose.msra.mxu1 %v1422_v29 }
 0x2ce   :  { %1709 = vmatprep.subr.mxu1 %v1950_v55 }
 0x2d1   :  { %1710 = vmatpush3.xpose.msra.mxu1 %v1421_v32 }
 0x2d2   :  { %1711 = vmatprep.subr.mxu1 %v1950_v55 }
 0x2d5   :  { %1712 = vmatpush3.xpose.msra.mxu1 %v1420_v35 }
 0x2d6   :  { %1713 = vmatprep.subr.mxu1 %v1950_v55 }
 0x2d9   :  { %1714 = vmatpush3.xpose.msra.mxu1 %v1419_v41 }
 0x2da   :  { %1715 = vmatprep.subr.mxu1 %v1950_v55 }
 0x2dd   :  { %1716 = vmatpush3.xpose.msra.mxu1 %v1418_v48 }
 0x2de   :  { %1717 = vmatprep.subr.mxu1 %v1950_v55 }
 0x2e1   :  { %1718 = vmatpush3.xpose.msra.mxu1 %v1417_v50 }
 0x2e2   :  { %1719 = vmatprep.subr.mxu1 %v1950_v55 }
 0x2e5   :  { %1720 = vmatpush3.xpose.msra.mxu1 %v1416_v44 }
 0x2e6   :  { %1721 = vmatprep.subr.mxu1 %v1950_v55 }
 0x2e9   :  { %1722 = vmatpush3.xpose.msra.mxu1 %v1415_v51 }
 0x2ea   :  { %1723 = vmatprep.subr.mxu1 %v1950_v55 }
 0x2ed   :  { %1724 = vmatpush3.xpose.msra.mxu1 %v1414_v56 }
 0x2ee   :  { %1725 = vmatprep.subr.mxu1 %v1950_v55 }
 0x2f1   :  { %1726 = vmatpush3.xpose.msra.mxu1 %v1413_v59 }
 0x2f2   :  { %1727 = vmatprep.subr.mxu1 %v1950_v55 }
 0x2f5   :  { %1728 = vmatpush3.xpose.msra.mxu1 %v1412_v62 }
 0x2f6   :  { %1729 = vmatprep.subr.mxu1 %v1950_v55 }
 0x2f9   :  { %1730 = vmatpush3.xpose.msra.mxu1 %v1411_v2 }
 0x2fa   :  { %1731 = vmatprep.subr.mxu1 %v1950_v55 }
 0x2fd   :  { %1732 = vmatpush3.xpose.msra.mxu1 %v1410_v36 }
 0x2fe   :  { %1733 = vmatprep.subr.mxu1 %v1950_v55 }
 0x301   :  { %1734 = vmatpush3.xpose.msra.mxu1 %v1409_v37 }
 0x302   :  { %1735 = vmatprep.subr.mxu1 %v1950_v55 }
 0x305   :  { %1736 = vmatpush3.xpose.msra.mxu1 %v1408_v4 }
 0x306   :  { %1737 = vmatprep.subr.mxu1 %v1950_v55 }
 0x309   :  { %1738 = vmatpush3.xpose.msra.mxu1 %v1407_v5 }
 0x30c   :  { %1740 = vmatmul.mubr.f32.vlgmr.msra.gmra.mxu1 %v1423_v57 }
 0x3cc   :  { %v1500_v7 = vpop.f32.mrf.mxu1 }
 0x3cd   :  { %v1501_v8 = vadd.f32 %v1500_v7, %v1433_v52 }
 0x3ce   :  { %v1741_v54 = vpop.f32.mrf.mxu1 }
 0x3cf   :  { %1504 = vst [vmem:[#allocation8] sm:$0x1] %v1501_v8 }
 0x3d0   :  { %1928 = shalt.err (!%p1925_p0)
}
 0x3d1   :  { %1514 = dma.vmem_to_hbm [thread:$0]  %s1512_s18, 16, %s2341_s9, [#allocation5]  }
 0x3d2   :  { %1941 = dma.done.wait [#allocation5], 16  }
 0x3d3   :  { %1942 = vsyncadd [#allocation5], 4294967280 }
 0x3d4   :  { %1518 = vsyncpa [#allocation4], 1 }
 0x3d5   :  { %1519 = vsyncpa [#allocation7], 1 }
 0x3d6   :  { %1520 = vsyncpa [#allocation5], 1 }

</bundles_post_ra>
